<compile_context>
chip_gen: v7x
topology: tpu7x:2x2x1
jax: 0.10.0
libtpu: 0.0.40
codegen_flags: <defaults>
</compile_context>

<pallas_src>
import jax
import jax.numpy as jnp
from jax.experimental import pallas as pl
from jax.experimental.pallas import tpu as pltpu


def _tpu_vmem_and_cores():
    """(per-core VMEM bytes, #TensorCores) with conservative fallbacks."""
    vmem = 64 << 20          # conservative default (v7x per-TC capacity)
    try:
        info = pltpu.get_tpu_info()
        v = getattr(info, "vmem_capacity_bytes", None)
        if v:
            vmem = int(v)
    except Exception:
        pass
    # Only v7x (64 MiB VMEM per TensorCore) has 2 TensorCores per chip.
    n_tc = 2 if vmem <= (64 << 20) else 1
    return vmem, n_tc


def _se_fused_kernel(x_ref, w1s_ref, w2_ref, b2_ref, o_ref):
    """Single-pass SE block on one (Nb, C, HW) batch block.

    w1s_ref: (Cmid, C) squeeze weight, pre-scaled by 1/HW (mean folded in).
    w2_ref:  (C, Cmid) excite weight.   b2_ref: (C, 1) excite bias.
    """
    nb, _, hw = x_ref.shape
    x_dtype = x_ref.dtype
    # Hoisted constant (JAX does not CSE broadcasts inside loops).
    ones_col = jnp.ones((hw, 1), x_dtype)

    def body(n, carry):
        xn = x_ref[n]                                                    # (C, HW)
        # Spatial sum on the MXU, canonical orientation, f32 accumulation.
        pooled = jnp.dot(xn, ones_col,
                         preferred_element_type=jnp.float32)            # (C, 1)
        hid = jnp.dot(w1s_ref[...], pooled,
                      preferred_element_type=jnp.float32)               # (Cmid, 1)
        y = jnp.dot(w2_ref[...], hid,
                    preferred_element_type=jnp.float32) + b2_ref[...]   # (C, 1)
        s = jax.nn.sigmoid(y).astype(x_dtype)                           # (C, 1), EUP
        # Gate multiply in the input dtype (no f32 copy of the block).
        o_ref[n] = (xn * s).astype(o_ref.dtype)
        return carry

    jax.lax.fori_loop(0, nb, body, 0, unroll=nb <= 8)


def _se_block_two_pass(x_flat, w1s, w2f, b2c, *, block_budget, vmem_limit):
    """Fallback when a single batch element exceeds the block budget.

    Pass 1: pool + gate, chunked over HW (accumulating the spatial sum in the
            resident (1, C, 1) output block, finalizing to sigmoid gates).
    Pass 2: scale x by the gate, chunked over HW (extra read pass of x).
    """
    N, C, HW = x_flat.shape
    Cmid = w1s.shape[0]
    itemsize = x_flat.dtype.itemsize

    hwc = (block_budget // (C * itemsize)) // 128 * 128   # lane-dense chunks
    hwc = min(max(hwc, 128), HW)
    n_chunks = -(-HW // hwc)

    def pool_gate_kernel(x_ref, w1s_ref, w2_ref, b2_ref, g_ref):
        h_idx = pl.program_id(1)
        xc = x_ref[0]                                                  # (C, hwc)
        # Mask spatial positions past HW so the ragged last chunk's padding
        # (unspecified values) cannot pollute the sum.
        col = jax.lax.broadcasted_iota(jnp.int32, xc.shape, 1) + h_idx * hwc
        xm = jnp.where(col < HW, xc, jnp.zeros_like(xc))
        ones_col = jnp.ones((hwc, 1), xc.dtype)
        partial = jnp.dot(xm, ones_col,
                          preferred_element_type=jnp.float32)          # (C, 1)

        @pl.when(h_idx == 0)
        def _():
            g_ref[...] = jnp.zeros_like(g_ref)

        g_ref[0] = g_ref[0] + partial

        @pl.when(h_idx == pl.num_programs(1) - 1)
        def _():
            pooled = g_ref[0]                                          # (C, 1) sum
            hid = jnp.dot(w1s_ref[...], pooled,
                          preferred_element_type=jnp.float32)          # (Cmid, 1)
            y = jnp.dot(w2_ref[...], hid,
                        preferred_element_type=jnp.float32) + b2_ref[...]
            g_ref[0] = jax.nn.sigmoid(y)

    gate = pl.pallas_call(
        pool_gate_kernel,
        out_shape=jax.ShapeDtypeStruct((N, C, 1), jnp.float32),
        grid_spec=pltpu.PrefetchScalarGridSpec(
            num_scalar_prefetch=0,
            grid=(N, n_chunks),
            in_specs=[
                pl.BlockSpec((1, C, hwc), lambda n, h: (n, 0, h)),
                pl.BlockSpec((Cmid, C), lambda n, h: (0, 0)),
                pl.BlockSpec((C, Cmid), lambda n, h: (0, 0)),
                pl.BlockSpec((C, 1), lambda n, h: (0, 0)),
            ],
            out_specs=pl.BlockSpec((1, C, 1), lambda n, h: (n, 0, 0)),
        ),
        compiler_params=pltpu.CompilerParams(
            dimension_semantics=("parallel", "arbitrary"),
            vmem_limit_bytes=vmem_limit,
        ),
    )(x_flat, w1s, w2f, b2c)

    def scale_kernel(x_ref, g_ref, o_ref):
        xc = x_ref[...]                                                # (1, C, hwc)
        s = g_ref[...].astype(xc.dtype)                                # (1, C, 1)
        o_ref[...] = (xc * s).astype(o_ref.dtype)

    return pl.pallas_call(
        scale_kernel,
        out_shape=jax.ShapeDtypeStruct((N, C, HW), x_flat.dtype),
        grid_spec=pltpu.PrefetchScalarGridSpec(
            num_scalar_prefetch=0,
            grid=(N, n_chunks),
            in_specs=[
                pl.BlockSpec((1, C, hwc), lambda n, h: (n, 0, h)),
                pl.BlockSpec((1, C, 1), lambda n, h: (n, 0, 0)),
            ],
            out_specs=pl.BlockSpec((1, C, hwc), lambda n, h: (n, 0, h)),
        ),
        compiler_params=pltpu.CompilerParams(
            dimension_semantics=("parallel", "parallel"),
            vmem_limit_bytes=vmem_limit,
        ),
    )(x_flat, gate)


def se_block(x_nchw, w1, w2, b2, *, max_block_bytes=None):
    """SEBlock forward.  x: (N, C, H, W); w1: (Cmid, C); w2: (C, Cmid); b2: (C,)."""
    N, C, H, W = x_nchw.shape
    Cmid = w1.shape[0]
    HW = H * W
    x_flat = x_nchw.reshape(N, C, HW)
    itemsize = x_flat.dtype.itemsize

    # Fold the 1/HW mean into the (linear) squeeze weight; keep the PyTorch
    # weight orientation so every in-kernel matmul has its contraction on the
    # LHS last dim / RHS first dim (no block transpose / reshape needed).
    w1s = w1.astype(jnp.float32) * (1.0 / float(HW))      # (Cmid, C)
    w2f = w2.astype(jnp.float32)                          # (C, Cmid)
    b2c = b2.reshape(C, 1).astype(jnp.float32)            # (C, 1)
    weight_bytes = (Cmid * C + C * Cmid + C) * 4

    # Generation-aware VMEM budget (128 MiB on v5e/v6e, 64 MiB per TC on v7x).
    vmem_cap, n_tc = _tpu_vmem_and_cores()
    vmem_budget = max(min(vmem_cap * 3 // 4, vmem_cap - (16 << 20)), 32 << 20)
    if max_block_bytes is None:
        # 2x double-buffered input block + 2x output block + ~1 block of
        # in-kernel temporaries (the pre-store product), plus weights + slack.
        block_budget = max((vmem_budget - 2 * weight_bytes - (2 << 20)) // 5,
                           1 << 20)
    else:
        block_budget = int(max_block_bytes)

    per_batch = C * HW * itemsize
    if per_batch > block_budget:
        out_flat = _se_block_two_pass(x_flat, w1s, w2f, b2c,
                                      block_budget=block_budget,
                                      vmem_limit=vmem_budget)
        return out_flat.reshape(N, C, H, W)

    nb = max(1, min(N, block_budget // per_batch))
    if n_tc >= 2 and N >= 2:
        nb = min(nb, (N + 1) // 2)   # keep >= 2 grid steps only when 2 TCs exist
    grid_n = -(-N // nb)             # ceil: Nb need not divide N

    # Roofline hint for XLA's scheduler: this call is HBM-bandwidth bound.
    cost = pl.CostEstimate(
        flops=int(3 * N * C * HW + 4 * N * C * Cmid),
        transcendentals=int(N * C),
        bytes_accessed=int(2 * N * C * HW * itemsize + weight_bytes),
    )

    out_flat = pl.pallas_call(
        _se_fused_kernel,
        out_shape=jax.ShapeDtypeStruct((N, C, HW), x_flat.dtype),
        grid_spec=pltpu.PrefetchScalarGridSpec(
            num_scalar_prefetch=0,
            grid=(grid_n,),
            in_specs=[
                pl.BlockSpec((nb, C, HW), lambda n: (n, 0, 0)),
                pl.BlockSpec((Cmid, C), lambda n: (0, 0)),
                pl.BlockSpec((C, Cmid), lambda n: (0, 0)),
                pl.BlockSpec((C, 1), lambda n: (0, 0)),
            ],
            out_specs=pl.BlockSpec((nb, C, HW), lambda n: (n, 0, 0)),
        ),
        compiler_params=pltpu.CompilerParams(
            dimension_semantics=("parallel",),
            vmem_limit_bytes=vmem_budget,
        ),
        cost_estimate=cost,
    )(x_flat, w1s, w2f, b2c)
    return out_flat.reshape(N, C, H, W)


def se_block_ref(x, w1, w2, b2):
    # Pure-JAX reference mirroring the PyTorch forward.
    pooled = jnp.mean(x, axis=(2, 3))                      # (N, C)
    h = pooled @ w1.T                                      # (N, Cmid)
    y = h @ w2.T + b2                                      # (N, C)
    s = jax.nn.sigmoid(y)[:, :, None, None]                # (N, C, 1, 1)
    return x * s


if __name__ == "__main__":
    se_ratio = 12

    def make_inputs(key, N, C, H, W):
        Cmid = C // se_ratio
        kx, k1, k2, kb = jax.random.split(key, 4)
        x = jax.random.normal(kx, (N, C, H, W), dtype=jnp.float32)
        # Conv2d(C, Cmid, 1, bias=False) weight -> (Cmid, C) after squeezing 1x1.
        w1 = jax.random.normal(k1, (Cmid, C), dtype=jnp.float32) * 0.1
        # Conv2d(Cmid, C, 1, bias=True) weight -> (C, Cmid), bias -> (C,).
        w2 = jax.random.normal(k2, (C, Cmid), dtype=jnp.float32) * 0.1
        b2 = jax.random.normal(kb, (C,), dtype=jnp.float32) * 0.1
        return x, w1, w2, b2

    # 1) Main fused path with automatic, generation-aware block sizing.
    x, w1, w2, b2 = make_inputs(jax.random.PRNGKey(0), 2, 24, 16, 16)
    out = jax.block_until_ready(se_block(x, w1, w2, b2))
    assert out.shape == x.shape
    assert jnp.allclose(out, se_block_ref(x, w1, w2, b2), atol=1e-5, rtol=1e-5)

    # 2) Main path with a ragged batch grid (N=3, Nb=2 forced -> cdiv grid of 2,
    #    masked writeback of the padded batch row).
    x, w1, w2, b2 = make_inputs(jax.random.PRNGKey(1), 3, 24, 16, 16)
    out = jax.block_until_ready(se_block(x, w1, w2, b2, max_block_bytes=60_000))
    assert out.shape == x.shape
    assert jnp.allclose(out, se_block_ref(x, w1, w2, b2), atol=1e-5, rtol=1e-5)

    # 3) Two-pass fallback (one batch element forced over the block budget),
    #    with a ragged spatial chunk (HW=300 -> 128-wide chunks, last masked).
    x, w1, w2, b2 = make_inputs(jax.random.PRNGKey(2), 2, 24, 12, 25)
    out = jax.block_until_ready(se_block(x, w1, w2, b2, max_block_bytes=8_192))
    assert out.shape == x.shape
    assert jnp.allclose(out, se_block_ref(x, w1, w2, b2), atol=1e-5, rtol=1e-5)

    print("KERNEL_OK")
</pallas_src>

<mosaic_0001>
module attributes {stable_mosaic.version = 11 : i64} {
  func.func @_se_fused_kernel(%arg0: i32, %arg1: memref<1x24x256xf32, #tpu.memory_space<vmem>>, %arg2: memref<2x24xf32, #tpu.memory_space<vmem>>, %arg3: memref<24x2xf32, #tpu.memory_space<vmem>>, %arg4: memref<24x1xf32, #tpu.memory_space<vmem>>, %arg5: memref<1x24x256xf32, #tpu.memory_space<vmem>>) attributes {dimension_semantics = [#tpu.dimension_semantics<parallel>], iteration_bounds = array<i64: 2>, scalar_prefetch = 0 : i64, scratch_operands = 0 : i64, tpu.core_type = #tpu.core_type<tc>, window_params = [{transform_indices = @transform_0, window_bounds = array<i64: 1, 24, 256>}, {pipeline_mode = #tpu.pipeline_mode<synchronous>, transform_indices = @transform_1, window_bounds = array<i64: 2, 24>}, {pipeline_mode = #tpu.pipeline_mode<synchronous>, transform_indices = @transform_2, window_bounds = array<i64: 24, 2>}, {pipeline_mode = #tpu.pipeline_mode<synchronous>, transform_indices = @transform_3, window_bounds = array<i64: 24, 1>}, {transform_indices = @transform_4, window_bounds = array<i64: 1, 24, 256>}]} {
    %cst = arith.constant 1.000000e+00 : f32
    %0 = vector.broadcast %cst : f32 to vector<256x1xf32>
    %c0_i32 = arith.constant 0 : i32
    %1 = arith.index_cast %c0_i32 : i32 to index
    %c0 = arith.constant 0 : index
    %c0_0 = arith.constant 0 : index
    %2 = vector.load %arg1[%1, %c0, %c0_0] : memref<1x24x256xf32, #tpu.memory_space<vmem>>, vector<1x24x256xf32>
    %3 = vector.shape_cast %2 : vector<1x24x256xf32> to vector<24x256xf32>
    %cst_1 = arith.constant dense<0.000000e+00> : vector<24x1xf32>
    %4 = tpu.matmul %3, %0, %cst_1 {dimension_numbers = #tpu.dot_dimension_numbers<[1], [0], [0], [1], [0, 0, 1, 1], [], []>} : vector<24x256xf32>, vector<256x1xf32>, vector<24x1xf32> -> vector<24x1xf32>
    %c0_2 = arith.constant 0 : index
    %c0_3 = arith.constant 0 : index
    %5 = vector.load %arg2[%c0_2, %c0_3] : memref<2x24xf32, #tpu.memory_space<vmem>>, vector<2x24xf32>
    %cst_4 = arith.constant dense<0.000000e+00> : vector<2x1xf32>
    %6 = tpu.matmul %5, %4, %cst_4 {dimension_numbers = #tpu.dot_dimension_numbers<[1], [0], [0], [1], [0, 0, 1, 1], [], []>} : vector<2x24xf32>, vector<24x1xf32>, vector<2x1xf32> -> vector<2x1xf32>
    %c0_5 = arith.constant 0 : index
    %c0_6 = arith.constant 0 : index
    %7 = vector.load %arg3[%c0_5, %c0_6] : memref<24x2xf32, #tpu.memory_space<vmem>>, vector<24x2xf32>
    %cst_7 = arith.constant dense<0.000000e+00> : vector<24x1xf32>
    %8 = tpu.matmul %7, %6, %cst_7 {dimension_numbers = #tpu.dot_dimension_numbers<[1], [0], [0], [1], [0, 0, 1, 1], [], []>} : vector<24x2xf32>, vector<2x1xf32>, vector<24x1xf32> -> vector<24x1xf32>
    %c0_8 = arith.constant 0 : index
    %c0_9 = arith.constant 0 : index
    %9 = vector.load %arg4[%c0_8, %c0_9] : memref<24x1xf32, #tpu.memory_space<vmem>>, vector<24x1xf32>
    %10 = arith.addf %8, %9 : vector<24x1xf32>
    %11 = arith.negf %10 : vector<24x1xf32>
    %12 = math.exp %11 : vector<24x1xf32>
    %cst_10 = arith.constant 1.000000e+00 : f32
    %13 = vector.broadcast %cst_10 : f32 to vector<24x1xf32>
    %14 = arith.addf %13, %12 : vector<24x1xf32>
    %15 = arith.divf %13, %14 : vector<24x1xf32>
    %16 = vector.broadcast %15 : vector<24x1xf32> to vector<24x256xf32>
    %17 = arith.mulf %3, %16 : vector<24x256xf32>
    %18 = arith.index_cast %c0_i32 : i32 to index
    %c0_11 = arith.constant 0 : index
    %c0_12 = arith.constant 0 : index
    %19 = vector.load %arg5[%18, %c0_11, %c0_12] : memref<1x24x256xf32, #tpu.memory_space<vmem>>, vector<1x24x256xf32>
    %20 = vector.shape_cast %19 : vector<1x24x256xf32> to vector<24x256xf32>
    %21 = vector.shape_cast %17 : vector<24x256xf32> to vector<1x24x256xf32>
    tpu.vector_store %arg5[%18, %c0_11, %c0_12], %21 {strides = array<i32>} : memref<1x24x256xf32, #tpu.memory_space<vmem>>, vector<1x24x256xf32>,
    %c1_i32 = arith.constant 1 : i32
    return
  }
  func.func @transform_0(%arg0: i32) -> (i32, i32, i32) {
    %c0_i32 = arith.constant 0 : i32
    %c0_i32_0 = arith.constant 0 : i32
    %c0_i32_1 = arith.constant 0 : i32
    return %arg0, %c0_i32, %c0_i32_0 : i32, i32, i32
  }
  func.func @transform_1(%arg0: i32) -> (i32, i32) {
    %c0_i32 = arith.constant 0 : i32
    %c0_i32_0 = arith.constant 0 : i32
    %c0_i32_1 = arith.constant 0 : i32
    return %c0_i32, %c0_i32_0 : i32, i32
  }
  func.func @transform_2(%arg0: i32) -> (i32, i32) {
    %c0_i32 = arith.constant 0 : i32
    %c0_i32_0 = arith.constant 0 : i32
    %c0_i32_1 = arith.constant 0 : i32
    return %c0_i32, %c0_i32_0 : i32, i32
  }
  func.func @transform_3(%arg0: i32) -> (i32, i32) {
    %c0_i32 = arith.constant 0 : i32
    %c0_i32_0 = arith.constant 0 : i32
    %c0_i32_1 = arith.constant 0 : i32
    return %c0_i32, %c0_i32_0 : i32, i32
  }
  func.func @transform_4(%arg0: i32) -> (i32, i32, i32) {
    %c0_i32 = arith.constant 0 : i32
    %c0_i32_0 = arith.constant 0 : i32
    %c0_i32_1 = arith.constant 0 : i32
    return %arg0, %c0_i32, %c0_i32_0 : i32, i32, i32
  }
}

</mosaic_0001>

<bundles_post_ra>
// kernel: tpu_custom_call.1
= control target key start
LH: loop header
LB: loop body
LE: loop exit
PB: predicated region body
PF: predicated region fallthrough
CT: control target
= control target key end

     0   :  { %9 = vsyncpa [#allocation3], 0  ;;  %s1129_s0 = inlined_call_operand.hbm [shape: f32[2,24,256], index: 0, kind: input, shape index: {}]   ;;  %s1130_s1 = inlined_call_operand.vmem [shape: f32[2,24], index: 1, kind: input, shape index: {}]   ;;  %s1131_s2 = inlined_call_operand.vmem [shape: f32[24,2], index: 2, kind: input, shape index: {}]   ;;  %s1132_s3 = inlined_call_operand.vmem [shape: f32[24,1], index: 3, kind: input, shape index: {}]   ;;  %s1133_s4 = inlined_call_operand.hbm [shape: f32[2,24,256], index: 4, kind: output, shape index: {}]  }
   0x1   :  { %11 = vsyncpa [#allocation3 + $0x1], 0 }
   0x2   :  { %12 = vsyncpa [#allocation4], 0 }
   0x3   :  { %14 = vsyncpa [#allocation4 + $0x1], 0  ;;  %s920_s15 = smov 0   ;;  %s922_s16 = smov 0  }
   0x4   :  { %s924_s17 = smov 0   ;;  %s926_s18 = smov 0  }
   0x5 LB: > { %s941_s19 = sadd.s32 4294967295, %s882_s18   ;;  %s609_s20 = sadd.s32 4294967294, %s882_s18   ;;  %s882_s18 = sphi %s926_s18, %s1145_s18   ;;  %s878_s17 = sphi %s924_s17, %s1144_s17   ;;  %s874_s16 = sphi %s922_s16, %s1143_s16   ;;  %s870_s15 = sphi %s920_s15, %s1142_s15  }
   0x6   : > { %s945_s21 = sadd.s32 1, %s882_s18   ;;  %s27_s22 = sadd.s32 1, %s878_s17 }
   0x7   : > { %s24_s23 = ssub.s32 %s882_s18, %s945_s21  ;;  %p34_p0 = scmp.ne.s32.totalorder %s878_s17, %s874_s16 }
   0x8   : > { %p25_p1 = scmp.eq.s32.totalorder %s24_s23, 0  ;;  %p35_p2 = scmp.eq.s32.totalorder %s882_s18, 0 }
   0x9   : > { %p40_p3 = scmp.ne.s32.totalorder %s874_s16, %s870_s15  ;;  %p41_p4 = scmp.eq.s32.totalorder %s941_s19, 0 }
   0xa   : > { %s957_s24 = scalar_select %p25_p1, %s878_s17, %s27_s22  }
   0xb   : > { %p36_p5 = por %p35_p2, %p34_p0  ;;  %p959_p6 = por %p41_p4, %p40_p3 }
   0xc   : > { %p127_p7 = scmp.eq.s32.totalorder %s941_s19, 1  ;;  %p133_p8 = scmp.eq.s32.totalorder %s609_s20, 1 }
   0xd   : > { %p729_p10 = scmp.lt.s32.totalorder %s882_s18, 2  ;;  %s162_s28 = sand.u32 1, %s878_s17  }
   0xe   : > { %p966_p11 = por %p127_p7, %p34_p0  ;;  %p970_p12 = por %p133_p8, %p40_p3 }
   0xf   : > { %s714_s29 = smul.u32 768, %s882_s18  ;;  %p981_p13 = pnand %p729_p10, %p36_p5 }
  0x10   : > { %s1136_s26 = scalar_select %p966_p11, 1, 0 }
  0x11   : > { %s1137_s27 = scalar_select %p970_p12, 1, 0 }
  0x12   : > { %s713_s30 = smul.u32 48, %s162_s28  ;;  %s979_s7 = scalar_lea.hbm %s1129_s0, %s714_s29 }
  0x13   : > { %s987_s11 = scalar_lea.sflag [#allocation3], %s162_s28  ;;  %s786_s12 = scalar_lea.hbm %s979_s7, 768 }
  0x14   : > { %s166_s9 = scalar_lea.vmem [#allocation2], %s713_s30  ;;  %p787_p0 = scmp.ne.s32.totalorder %s979_s7, %s786_s12 }
  0x15   : > { %s173_s10 = sshll.u32 %s166_s9, 4  ;;  %p788_p1 = pneg %p981_p13  ;;  %s985_s10 = int_to_ptr.vmem [resolvable:$true] %s173_s10 }
  0x16   : > { %s791_s20 = scalar_lea.hbm %s1129_s0, 1536  ;;  %p792_p4 = scmp.lt.u32.totalorder %s979_s7, %s1129_s0 }
  0x17   : > { %p789_p2 = pnand %p788_p1, %p787_p0  ;;  %p793_p5 = scmp.lt.u32.totalorder %s791_s20, %s786_s12 }
  0x18   : > { %p795_p8 = scmp.lt.u32.totalorder %s786_s12, %s979_s7 }
  0x19   : > { %p790_p3 = pneg %p789_p2  ;;  %p794_p7 = por %p793_p5, %p792_p4 }
  0x1b   : > { %p796_p10 = por %p795_p8, %p794_p7 }
  0x1d   : > { %p797_p9 = pnand %p796_p10, %p790_p3 }
  0x1f   : > { %800 = shalt.err (!%p797_p9)
}
  0x20   : > { %s801_s28 = scalar_lea.vmem %s985_s10, 768  ;;  %s884_s29 = smov [#allocation2]  }
  0x21   : > { %p802_p0 = scmp.ne.s32.totalorder %s985_s10, %s801_s28  ;;  %s806_s30 = sshll.u32 %s884_s29, 4  ;;  %s807_s30 = int_to_ptr.vmem [resolvable:$false] %s806_s30 }
  0x22   : > { %s808_s5 = scalar_lea.vmem %s807_s30, 1536  ;;  %p809_p11 = scmp.lt.s32.totalorder %s985_s10, %s807_s30 }
  0x23   : > { %p804_p2 = pnand %p802_p0, %p788_p1  ;;  %p810_p4 = scmp.lt.s32.totalorder %s808_s5, %s801_s28 }
  0x25   : > { %p805_p12 = pneg %p804_p2  ;;  %p811_p5 = por %p810_p4, %p809_p11 }
  0x27   : > { %p812_p7 = pnand %p811_p5, %p805_p12 }
  0x29   : > { %815 = shalt.err (!%p812_p7)
}
  0x2a   : > { %s885_s6 = smov 256   ;;  %s886_s9 = smov 16  }
  0x2b   : > { %724 = dma.hbm_to_vmem [thread:$0]  (!%p981_p13), %s979_s7, 768, %s985_s10, %s987_s11, %s885_s6, %s885_s6, %s886_s9  }
  0x2c   : > { %p613_p9 = scmp.ge.s32.totalorder %s882_s18, 1  ;;  %p181_p1 = scmp.lt.s32.totalorder %s882_s18, 3 }
  0x2e   : > { %p182_p3 = pnand %p613_p9, %p181_p1 }
  0x2f   : > { %s1018_s12 = sand.u32 (!%p182_p3), 1, %s874_s16  }
  0x30   : > { %185 = sbr.rel (%p182_p3) target bundleno = 921 (0x399), region = 36  ;;  %s188_s14 = scalar_lea.sflag (!%p182_p3), [#allocation3], %s1018_s12 }
  0x31   : > { %s715_s13 = smul.u32 (!%p182_p3), 48, %s1018_s12 }
  0x33   : > { %s191_s20 = scalar_lea.vmem (!%p182_p3), [#allocation2], %s715_s13 }
  0x37   : > { %861 = dma.done.wait (%p959_p6), %s188_s14, 768  }
  0x38   : > { %863 = vsyncadd (%p959_p6), %s188_s14, 4294966528  ;;  %v887_v0 = vmov 1.0|1.0   ;;  %v1028_v1 = vld [vmem:[%s191_s20 + $0x8] sm:$0xff]  ;;  %v1031_v2 = vld [vmem:[%s191_s20] sm:$0xff]  ;;  %v888_v7 = vmov 0.0|0.0  }
  0x39   : > { %694 = vmatprep.subr.bf16.mxu0 %v887_v0  ;;  %286 = vmatprep.mubr.f32.mxu0 %v1028_v1  ;;  %v1033_v3 = vld [vmem:[%s191_s20 + $0x18] sm:$0xff]  ;;  %v1037_v4 = vld [vmem:[%s191_s20 + $0x10] sm:$0xff]  ;;  %v1039_v5 = vld [vmem:[%s191_s20 + $0x28] sm:$0xff]  ;;  %vm889_vm0 = vmmov 0   ;;  %v890_v8 = vmov 0.0   ;;  %vm303_vm1 = vcmask 195584  }
  0x3a   : > { %695 = vmatpush3.bf16.msra.mxu0 %v887_v0  ;;  %v1043_v6 = vld [vmem:[%s191_s20 + $0x20] sm:$0xff]  ;;  %710 = vmatprep.subr.bf16.mxu1 %v888_v7  ;;  %vm393_vm2 = vcmask 1041408   ;;  %vm383_vm3 = vcmask 15360   ;;  %v378_v23 = vld [vmem:[%s1131_s2 + $0x8] sm:$0xff]  ;;  %v891_v25 = vmov 0   ;;  %s215_s20 = scalar_lea.vmem [#allocation5], %s715_s13 }
  0x3b   : > { %696 = vmatprep.subr.bf16.mxu0 %v887_v0  ;;  %680 = vmatprep.mubr.msk.f32.mxu1 %vm889_vm0, %v890_v8  ;;  %v302_v19 = vld [vmem:[%s1130_s1] sm:$0x3]  ;;  %v379_v24 = vld [vmem:[%s1131_s2 + $0x10] sm:$0xff]  ;;  %v381_v30 = vld [vmem:[%s1132_s3 + $0x8] sm:$0xff]  ;;  %s536_s25 = sshll.u32 %s215_s20, 4  ;;  %s716_s7 = smul.u32 768, %s941_s19  ;;  %s1078_s25 = int_to_ptr.vmem [resolvable:$true] %s536_s25 }
  0x3c   : > { %v377_v20 = vld [vmem:[%s1131_s2] sm:$0xff]  ;;  %772 = vset.pattern.permute.xlu0 %v891_v25  ;;  %773 = vset.pattern.permute.xlu1 %v891_v25  ;;  %v382_v35 = vld [vmem:[%s1132_s3 + $0x10] sm:$0xff]  ;;  %s523_s19 = scalar_lea.sflag [#allocation4], %s1018_s12  ;;  %s816_s11 = scalar_lea.vmem %s1078_s25, 768 }
  0x3d   : > { %v380_v26 = vld [vmem:[%s1132_s3] sm:$0xff]  ;;  %s1083_s10 = scalar_lea.hbm %s1133_s4, %s716_s7  ;;  %p817_p6 = scmp.ne.s32.totalorder %s1078_s25, %s816_s11 }
  0x3e   : > { %697 = vmatpush3.bf16.msra.mxu0 %v887_v0  ;;  %p1139_p11 = scmp.ne.s32.totalorder %s1136_s26, 0  ;;  %s892_s22 = smov [#allocation5]  }
  0x3f   : > { %698 = vmatprep.subr.bf16.mxu0 %v887_v0  ;;  %s820_s23 = sshll.u32 %s892_s22, 4  ;;  %s821_s23 = int_to_ptr.vmem [resolvable:$false] %s820_s23 }
  0x40   : > { %p818_p12 = pnand %p817_p6, %p1139_p11  ;;  %s822_s28 = scalar_lea.vmem %s821_s23, 1536 }
  0x41   : > { %p823_p8 = scmp.lt.s32.totalorder %s1078_s25, %s821_s23  ;;  %p824_p10 = scmp.lt.s32.totalorder %s822_s28, %s816_s11 }
  0x42   : > { %699 = vmatpush3.bf16.msra.mxu0 %v887_v0  ;;  %p819_p13 = pneg %p818_p12 }
  0x43   : > { %700 = vmatprep.subr.bf16.mxu0 %v887_v0  ;;  %p825_p0 = por %p824_p10, %p823_p8 }
  0x45   : > { %p826_p2 = pnand %p825_p0, %p819_p13 }
  0x46   : > { %701 = vmatpush3.bf16.msra.mxu0 %v887_v0 }
  0x47   : > { %702 = vmatprep.subr.bf16.mxu0 %v887_v0 }
  0x4a   : > { %703 = vmatpush3.bf16.msra.mxu0 %v887_v0 }
  0x4b   : > { %704 = vmatprep.subr.bf16.mxu0 %v887_v0 }
  0x4e   : > { %705 = vmatpush3.bf16.msra.mxu0 %v887_v0 }
  0x4f   : > { %706 = vmatprep.subr.bf16.mxu0 %v887_v0 }
  0x52   : > { %707 = vmatpush3.bf16.msra.mxu0 %v887_v0 }
  0x53   : > { %708 = vmatprep.subr.bf16.mxu0 %v887_v0 }
  0x56   : > { %709 = vmatpush3.bf16.msra.mxu0 %v887_v0 }
  0x59   : > { %287 = vmatmul.mubr.f32.vlgmr.msra.gmra.mrb[0].mxu0 %v1031_v2 }
  0x5a   : > { %291 = vmatprep.mubr.f32.mxu0 %v1033_v3 }
  0x5d   : > { %292 = vmatmul.mubr.f32.gmra.mrb[2].mxu0 %v1037_v4 }
  0x5e   : > { %296 = vmatprep.mubr.f32.mxu0 %v1039_v5 }
  0x61   : > { %297 = vmatmul.mubr.f32.gmra.mrb[4].mxu0 %v1043_v6 }
 0x12c   : > { %v657_v9 = vpop.f32.mrb[0].mxu0 }
 0x12d   : > { %v658_v10 = vpop.f32.mrb[1].mxu0 }
 0x12e   : > { %v659_v11 = vadd.f32 %v658_v10, %v657_v9 }
 0x130   : > { %v660_v12 = vpop.f32.mrb[2].mxu0 }
 0x131   : > { %v661_v13 = vpop.f32.mrb[3].mxu0 }
 0x132   : > { %v662_v14 = vadd.f32 %v661_v13, %v660_v12 }
 0x134   : > { %v663_v15 = vpop.f32.mrb[4].mxu0  ;;  %v711_v16 = vpack.c.bf16 %v662_v14, %v659_v11 }
 0x135   : > { %v664_v17 = vpop.f32.mrb[5].mxu0 }
 0x136   : > { %v665_v18 = vadd.f32 %v664_v17, %v663_v15  ;;  %712 = vmatpush3.bf16.msra.mxu1 %v711_v16 }
 0x137   : > { %678 = vmatprep.subr.mxu1 %v890_v8 }
 0x13a   : > { %679 = vmatpush3.msra.mxu1 %v665_v18 }
 0x13b   : > { %681 = vmatmul.mubr.msk.f32.vlgmr.msra.gmra.mrb[0].mxu1 %vm303_vm1, %v302_v19  ;;  %683 = vmatprep.subr.mxu1 %v890_v8 }
 0x13c   : > { %685 = vmatprep.mubr.msk.f32.mxu1 %vm889_vm0, %v890_v8 }
 0x20e   : > { %v373_v21 = vpop.f32.mrb[0].mxu1 }
 0x20f   : > { %v682_v22 = vpop.f32.mrb[1].mxu1  ;;  %684 = vmatpush3.msk.msra.mxu1 %vm393_vm2, %v373_v21 }
 0x210   : > { %686 = vmatmul.mubr.msk.f32.vlgmr.msra.gmra.mrb[2].mxu1 %vm383_vm3, %v377_v20 }
 0x211   : > { %688 = vmatprep.mubr.msk.f32.mxu1 %vm889_vm0, %v890_v8 }
 0x214   : > { %689 = vmatmul.mubr.msk.f32.gmra.mrb[4].mxu1 %vm383_vm3, %v378_v23 }
 0x215   : > { %691 = vmatprep.mubr.msk.f32.mxu1 %vm889_vm0, %v890_v8 }
 0x218   : > { %692 = vmatmul.mubr.msk.f32.gmra.mrb[6].mxu1 %vm383_vm3, %v379_v24 }
 0x2e3   : > { %v463_v27 = vpop.f32.mrb[2].mxu1 }
 0x2e4   : > { %v464_v28 = vadd.f32 %v463_v27, %v380_v26  ;;  %v687_v29 = vpop.f32.mrb[3].mxu1 }
 0x2e6   : > { %v619_v31 = vmul.f32 -1.442695, %v464_v28 }
 0x2e7   : > { %v468_v32 = vpop.f32.mrb[4].mxu1 }
 0x2e8   : > { %774 = vpow2.f32 %v619_v31  ;;  %v469_v33 = vadd.f32 %v468_v32, %v381_v30  ;;  %v690_v34 = vpop.f32.mrb[5].mxu1 }
 0x2ea   : > { %v620_v36 = vmul.f32 -1.442695, %v469_v33 }
 0x2eb   : > { %v473_v37 = vpop.f32.mrb[6].mxu1 }
 0x2ec   : > { %776 = vpow2.f32 %v620_v36  ;;  %v474_v38 = vadd.f32 %v473_v37, %v382_v35  ;;  %v693_v39 = vpop.f32.mrb[7].mxu1 }
 0x2ee   : > { %v621_v40 = vmul.f32 -1.442695, %v474_v38 }
 0x2f0   : > { %778 = vpow2.f32 %v621_v40 }
 0x2f2   : > { %v775_v41 = vpop.eup %774 }
 0x2f3   : > { %v486_v42 = vadd.f32 1.0, %v775_v41 }
 0x2f5   : > { %780 = vrcp.f32 %v486_v42 }
 0x2f6   : > { %v777_v43 = vpop.eup %776 }
 0x2f7   : > { %v487_v44 = vadd.f32 1.0, %v777_v43 }
 0x2f9   : > { %782 = vrcp.f32 %v487_v44 }
 0x2fa   : > { %v779_v45 = vpop.eup %778 }
 0x2fb   : > { %v488_v46 = vadd.f32 1.0, %v779_v45 }
 0x2fd   : > { %784 = vrcp.f32 %v488_v46 }
 0x2ff   : > { %v781_v47 = vpop.eup %780 }
 0x300   : > { %497 = vperm.xlu0 %772, %v781_v47  }
 0x303   : > { %v783_v48 = vpop.eup %782 }
 0x304   : > { %502 = vperm.xlu0 %772, %v783_v48  }
 0x307   : > { %v785_v49 = vpop.eup %784 }
 0x308   : > { %507 = vperm.xlu1 %773, %v785_v49  }
 0x37f   : > { %v498_v50 = vpop.permute.xlu0 %497 }
 0x380   : > { %v510_v51 = vmul.f32 %v498_v50, %v1031_v2  ;;  %v511_v52 = vmul.f32 %v498_v50, %v1028_v1 }
 0x382   : > { %516 = vst [vmem:[%s215_s20] sm:$0xff] %v510_v51  ;;  %517 = vst [vmem:[%s215_s20 + $0x8] sm:$0xff] %v511_v52 }
 0x383   : > { %v503_v53 = vpop.permute.xlu0 %502 }
 0x384   : > { %v512_v54 = vmul.f32 %v503_v53, %v1037_v4  ;;  %v513_v55 = vmul.f32 %v503_v53, %v1033_v3 }
 0x386   : > { %518 = vst [vmem:[%s215_s20 + $0x10] sm:$0xff] %v512_v54  ;;  %519 = vst [vmem:[%s215_s20 + $0x18] sm:$0xff] %v513_v55 }
 0x387   : > { %v508_v56 = vpop.permute.xlu1 %507 }
 0x388   : > { %v514_v57 = vmul.f32 %v508_v56, %v1043_v6  ;;  %v515_v58 = vmul.f32 %v508_v56, %v1039_v5 }
 0x38a   : > { %520 = vst [vmem:[%s215_s20 + $0x20] sm:$0xff] %v514_v57  ;;  %521 = vst [vmem:[%s215_s20 + $0x28] sm:$0xff] %v515_v58 }
 0x38b   : > { %829 = shalt.err (!%p826_p2)
}
 0x38c   : > { %s830_s29 = scalar_lea.hbm %s1083_s10, 768  ;;  %s834_s6 = scalar_lea.hbm %s1133_s4, 1536 }
 0x38d   : > { %p831_p4 = scmp.ne.s32.totalorder %s1083_s10, %s830_s29  ;;  %p835_p9 = scmp.lt.u32.totalorder %s1083_s10, %s1133_s4 }
 0x38e   : > { %p836_p1 = scmp.lt.u32.totalorder %s834_s6, %s830_s29  ;;  %p838_p6 = scmp.lt.u32.totalorder %s830_s29, %s1083_s10 }
 0x38f   : > { %p832_p5 = pnand %p831_p4, %p1139_p11 }
 0x390   : > { %p837_p3 = por %p836_p1, %p835_p9 }
 0x391   : > { %p833_p7 = pneg %p832_p5 }
 0x392   : > { %p839_p12 = por %p838_p6, %p837_p3 }
 0x394   : > { %p840_p13 = pnand %p839_p12, %p833_p7 }
 0x396   : > { %843 = shalt.err (!%p840_p13)
}
 0x397   : > { %s893_s20 = smov 256   ;;  %s894_s7 = smov 16  }
 0x398   : > { %719 = dma.vmem_to_hbm [thread:$0]  (%p1139_p11), %s1078_s25, 768, %s1083_s10, %s523_s19, %s893_s20, %s893_s20, %s894_s7  }
 0x399 PF: > { %s551_s13 = sand.u32 1, %s870_s15   ;;  %p1140_p8 = scmp.ne.s32.totalorder %s1137_s27, 0 }
 0x39a   : > { %p1141_p10 = scmp.ge.s32.totalorder %s882_s18, 2  ;;  %s552_s8 = scalar_lea.sflag [#allocation4], %s551_s13 }
 0x39c   : > { %p726_p0 = pnand %p1141_p10, %p1140_p8 }
 0x39e   : > { %865 = dma.done.wait (!%p726_p0), %s552_s8, 768  }
 0x39f   : > { %867 = vsyncadd (!%p726_p0), %s552_s8, 4294966528  ;;  %p17_p2 = scmp.ge.s32.totalorder %s945_s21, 4   ;;  %s1142_s15 = smov %s874_s16 }
 0x3a0   : > { %s1143_s16 = smov %s878_s17  ;;  %s1144_s17 = smov %s957_s24 }
 0x3a1   : > { %s1145_s18 = smov %s945_s21  ;;  %19 = sbr.rel (!%p17_p2) target bundleno = 5 (0x5), region = 81 }
 0x3a8   :  { %557 = vsyncpa [#allocation3], 1 }
 0x3a9   :  { %559 = vsyncpa [#allocation3 + $0x1], 1 }
 0x3aa   :  { %560 = vsyncpa [#allocation4], 1 }
 0x3ab   :  { %562 = vsyncpa [#allocation4 + $0x1], 1 }

</bundles_post_ra>
